<compile_context>
chip_gen: v5e
topology: v5e:2x2
jax: 0.10.0
libtpu: 0.0.40
codegen_flags: <defaults>
</compile_context>

<pallas_src>
import functools
import itertools

import jax
import jax.numpy as jnp
import numpy as np
from jax.experimental import pallas as pl
from jax.experimental.pallas import tpu as pltpu


def _round_up(x, m):
    return (x + m - 1) // m * m


def _cdiv(a, b):
    return -(-a // b)


# -----------------------------------------------------------------------------
# Fused Pallas kernel: weighted (class + L_p bbox + GIoU) pairwise cost for one
# block of prediction rows against one block of (padded) targets, all branches
# summed into a single output tile.
# -----------------------------------------------------------------------------
def _make_fused_kernel(segments, box_sets, w_bbox, w_giou):
    # segments: ((lane_start, n_classes, class_weight), ...) — static.
    # box_sets: ((col_offset_into_packed_boxes, p_norm), ...) — static.
    segments = tuple((int(s), int(c), float(w)) for s, c, w in segments)
    box_sets = tuple((int(col), int(p)) for col, p in box_sets)
    w_bbox = float(w_bbox)
    w_giou = float(w_giou)

    def kernel(logits_ref, boxes_ref, onehot_ref, tboxes_ref, out_ref):
        # ---------------- class cost: per-branch softmax + ONE MXU matmul -----
        lg = logits_ref[...].astype(jnp.float32)                 # (TM, C_total)
        if len(segments) == 1:
            _, _, w = segments[0]
            m = jnp.max(lg, axis=-1, keepdims=True)
            e = jnp.exp(lg - m)
            s = jnp.sum(e, axis=-1, keepdims=True)
            probs_scaled = e * ((-w) * pl.reciprocal(s, approx=True))
        else:
            lane = jax.lax.broadcasted_iota(jnp.int32, lg.shape, 1)
            masks = [(lane >= s0) & (lane < s0 + c) for s0, c, _ in segments]
            # per-branch max (numerical stability), broadcast back to full width
            m_full = jnp.zeros_like(lg)
            for mask in masks:
                m_b = jnp.max(jnp.where(mask, lg, -jnp.inf), axis=-1, keepdims=True)
                m_full = jnp.where(mask, m_b, m_full)
            e = jnp.exp(lg - m_full)
            # per-branch normalization, with the class weight folded into the scale
            scale = jnp.zeros_like(lg)
            for mask, (_, _, w) in zip(masks, segments):
                s_b = jnp.sum(jnp.where(mask, e, 0.0), axis=-1, keepdims=True)
                scale = jnp.where(mask, (-w) * pl.reciprocal(s_b, approx=True), scale)
            probs_scaled = e * scale
        # resident one-hot is f32 (no per-step cast); single K = C_total contraction
        cost = jnp.dot(probs_scaled, onehot_ref[...],
                       preferred_element_type=jnp.float32)       # (TM, TN)

        # ---------------- bbox L_p + GIoU costs (accumulate, no zeros init) ---
        pb = boxes_ref[...]                                      # (TM, 4*nsets) f32 cxcywh
        tb = tboxes_ref[...]                                     # (4*nsets, TN) f32 cxcywh
        for col, p_norm in box_sets:
            pcx, pcy = pb[:, col + 0:col + 1], pb[:, col + 1:col + 2]
            pw, ph = pb[:, col + 2:col + 3], pb[:, col + 3:col + 4]
            tcx, tcy = tb[col + 0:col + 1, :], tb[col + 1:col + 2, :]
            tw, th = tb[col + 2:col + 3, :], tb[col + 3:col + 4, :]

            if w_bbox != 0.0:
                dcx, dcy, dw, dh = pcx - tcx, pcy - tcy, pw - tw, ph - th
                if p_norm == 1:                                  # torch.cdist(..., p=1)
                    dist = jnp.abs(dcx) + jnp.abs(dcy) + jnp.abs(dw) + jnp.abs(dh)
                else:                                            # torch.cdist default p=2
                    d2 = dcx * dcx + dcy * dcy + dw * dw + dh * dh
                    dist = d2 * jax.lax.rsqrt(jnp.maximum(d2, 1e-20))  # EUP rsqrt
                cost = cost + w_bbox * dist

            if w_giou != 0.0:
                # cxcywh -> xyxy
                px0, py0 = pcx - 0.5 * pw, pcy - 0.5 * ph
                px1, py1 = pcx + 0.5 * pw, pcy + 0.5 * ph
                tx0, ty0 = tcx - 0.5 * tw, tcy - 0.5 * th
                tx1, ty1 = tcx + 0.5 * tw, tcy + 0.5 * th
                area_p = (px1 - px0) * (py1 - py0)               # (TM,1)
                area_t = (tx1 - tx0) * (ty1 - ty0)               # (1,TN)
                inter = (jnp.maximum(jnp.minimum(px1, tx1) - jnp.maximum(px0, tx0), 0.0)
                         * jnp.maximum(jnp.minimum(py1, ty1) - jnp.maximum(py0, ty0), 0.0))
                union = area_p + area_t - inter
                # eps-clamped approximate reciprocals (EUP); no where/select guards —
                # union/enc > 0 for valid cxcywh boxes and the 0.5-size padding dummies.
                inv_union = pl.reciprocal(jnp.maximum(union, 1e-9), approx=True)
                iou = inter * inv_union
                enc = (jnp.maximum(jnp.maximum(px1, tx1) - jnp.minimum(px0, tx0), 0.0)
                       * jnp.maximum(jnp.maximum(py1, ty1) - jnp.minimum(py0, ty0), 0.0))
                inv_enc = pl.reciprocal(jnp.maximum(enc, 1e-9), approx=True)
                giou = iou - (enc - union) * inv_enc
                cost = cost + (-w_giou) * giou

        out_ref[...] = cost

    return kernel


# -----------------------------------------------------------------------------
# Generation-aware tiling / VMEM policy.
# -----------------------------------------------------------------------------
def _vmem_policy():
    """Returns (vmem_limit_cap_bytes, big_single_core)."""
    kind = ""
    try:
        kind = jax.devices()[0].device_kind.lower()
    except Exception:
        pass
    # v4 / v5e / v5p / v6e: 128 MiB VMEM, one TensorCore per chip.
    big = any(tag in kind for tag in ("v4", "v5", "v6"))
    cap = (100 if big else 46) * (1 << 20)
    try:  # clamp below the real capacity when the query is available
        cap = min(cap, int(pltpu.get_tpu_info().vmem_capacity_bytes) - (8 << 20))
    except Exception:
        pass
    return max(cap, 16 << 20), big


def _choose_rows_tiling(n, big_vmem):
    """Pick (n_pad, tm, n_row_tiles). tm is a multiple of 16 (bf16 sublane packing)."""
    n_pad = _round_up(max(n, 16), 16)
    if big_vmem:
        # 1 TensorCore, 128 MiB VMEM: one big tile when possible (grid steps are pure
        # serial overhead on these chips).
        tm_max = 1024
        k = _cdiv(n_pad, tm_max)
    else:
        # v7x-like: 64 MiB VMEM, 2 TensorCores: keep the row-tile count even when tiling
        # so both cores get equal work under dimension_semantics=("parallel", ...).
        tm_max = 512
        k = _cdiv(n_pad, tm_max)
        if k > 1 and (k % 2):
            k += 1
        if k == 1 and n_pad > 256:
            k = 2
    tm = _round_up(_cdiv(n_pad, k), 16)
    n_pad = k * tm
    return n_pad, tm, k


def _pad_rows(x, n_pad, value=0.0):
    n = x.shape[0]
    if n_pad == n:
        return x
    return jnp.pad(x, ((0, n_pad - n), (0, 0)), constant_values=value)


def _pad_cols(x, t_pad, value=0.0):
    t = x.shape[1]
    if t_pad == t:
        return x
    return jnp.pad(x, ((0, 0), (0, t_pad - t)), constant_values=value)


def _tile_bytes(rows, cols, itemsize):
    """Real VMEM footprint of one buffer: lane dim pads to 128, sublane to 8 (f32)/16 (bf16)."""
    sub = 8 if itemsize >= 4 else 16
    return _round_up(max(rows, 1), sub) * _round_up(max(cols, 1), 128) * itemsize


def _fused_pairwise_cost(logits_cat, boxes_cat, onehot_cat_t, tboxes_cat_t,
                         segments, box_sets, *, w_bbox, w_giou):
    """Fused weighted pairwise cost matrix [N, T] for all branches (one pallas_call)."""
    n, c_total = logits_cat.shape
    nbox_cols = boxes_cat.shape[1]
    t = onehot_cat_t.shape[1]

    cap, big_vmem = _vmem_policy()
    n_pad, tm, n_row_tiles = _choose_rows_tiling(n, big_vmem)

    # Target (lane) tiling: lane-dense 128 multiples; tile targets if T is huge so the
    # double-buffered output tile + resident targets never blow VMEM (v7x: 64 MiB).
    tn_max = 2048 if big_vmem else 1024
    t_pad = _round_up(max(t, 1), 128)
    if t_pad > tn_max:
        tn = tn_max
        t_pad = _round_up(t_pad, tn)
    else:
        tn = t_pad
    n_col_tiles = t_pad // tn

    # bf16 for the dominant logits stream (exact 0/1 one-hot stays f32 — it is resident,
    # so its HBM/VMEM cost is one-time and we avoid a per-step cast); f32 box math.
    logits_p = _pad_rows(logits_cat.astype(jnp.bfloat16), n_pad, 0.0)
    boxes_p = _pad_rows(boxes_cat.astype(jnp.float32), n_pad, 0.5)   # non-degenerate dummies
    onehot_p = _pad_cols(onehot_cat_t.astype(jnp.float32), t_pad, 0.0)  # zero class cost for pads
    tboxes_p = _pad_cols(tboxes_cat_t.astype(jnp.float32), t_pad, 0.5)  # non-degenerate dummies

    # VMEM budget with real padded tile shapes; assume everything double-buffered.
    per_buf = (_tile_bytes(tm, c_total, 2) + _tile_bytes(tm, nbox_cols, 4)
               + _tile_bytes(c_total, tn, 4) + _tile_bytes(nbox_cols, tn, 4)
               + _tile_bytes(tm, tn, 4))
    vmem_need = 2 * per_buf
    vmem_limit = int(min(max(vmem_need + (8 << 20), 16 << 20), cap))

    kernel = _make_fused_kernel(segments, box_sets, w_bbox, w_giou)

    out = pl.pallas_call(
        kernel,
        out_shape=jax.ShapeDtypeStruct((n_pad, t_pad), jnp.float32),
        grid_spec=pltpu.PrefetchScalarGridSpec(
            num_scalar_prefetch=0,
            grid=(n_row_tiles, n_col_tiles),
            in_specs=[
                pl.BlockSpec((tm, c_total), lambda i, j: (i, 0)),      # packed logits
                pl.BlockSpec((tm, nbox_cols), lambda i, j: (i, 0)),    # packed boxes
                pl.BlockSpec((c_total, tn), lambda i, j: (0, j)),      # resident one-hot
                pl.BlockSpec((nbox_cols, tn), lambda i, j: (0, j)),    # resident target boxes
            ],
            out_specs=pl.BlockSpec((tm, tn), lambda i, j: (i, j)),
        ),
        compiler_params=pltpu.CompilerParams(
            dimension_semantics=("parallel", "parallel"),
            vmem_limit_bytes=vmem_limit),
    )(logits_p, boxes_p, onehot_p, tboxes_p)
    return out[:n, :t]


# -----------------------------------------------------------------------------
# Host-side exact assignment (the Hungarian step of the original module).
# -----------------------------------------------------------------------------
def _exact_linear_sum_assignment(cost):
    # TODO(synk): scipy.optimize.linear_sum_assignment (Hungarian) is a sequential,
    # data-dependent host-side algorithm with no clean Pallas equivalent; an exact
    # brute-force search is used here (fine for the small demo sizes).
    cost = np.asarray(cost, dtype=np.float64)
    nr, nc = cost.shape
    if nr < nc:
        cj, ri = _exact_linear_sum_assignment(cost.T)
        order = np.argsort(ri)
        return ri[order], cj[order]
    best_total, best_rows = None, None
    cols = np.arange(nc)
    for rows in itertools.permutations(range(nr), nc):
        total = cost[list(rows), cols].sum()
        if best_total is None or total < best_total:
            best_total, best_rows = total, rows
    rows = np.asarray(best_rows)
    order = np.argsort(rows)
    return rows[order], cols[order]


# -----------------------------------------------------------------------------
# Matcher wrapper (mirrors HungarianMatcher.forward semantics).
# -----------------------------------------------------------------------------
class HungarianMatcherPallas:
    def __init__(self, cost_obj_class=1.0, cost_rel_class=1.0, cost_bbox=1.0, cost_giou=1.0):
        assert cost_obj_class != 0 or cost_rel_class != 0 or cost_bbox != 0 or cost_giou != 0, \
            "all costs cant be 0"
        self.cost_obj_class = cost_obj_class
        self.cost_rel_class = cost_rel_class
        self.cost_bbox = cost_bbox
        self.cost_giou = cost_giou

    def compute_cost(self, pred_obj_logits, pred_obj_boxes, target_obj_labels, target_obj_boxes,
                     pred_sub_logits=None, pred_sub_boxes=None, target_sub_labels=None,
                     target_sub_boxes=None, pred_rel_logits=None, target_rel_labels=None):
        pred_logits = pred_obj_logits[-1]
        pred_boxes = pred_obj_boxes[-1]
        bs, nq = pred_logits.shape[:2]
        n = bs * nq

        obj_logits = pred_logits.reshape(n, -1)
        obj_boxes = pred_boxes.reshape(n, 4)
        t_labels = jnp.concatenate(target_obj_labels)
        t_boxes = jnp.concatenate(target_obj_boxes)
        c_obj = obj_logits.shape[-1]

        # Target-side one-hot / box matrices are built once per call and stay resident
        # in VMEM across all row tiles inside the fused kernel.
        onehot_obj_t = jax.nn.one_hot(t_labels, c_obj, dtype=jnp.float32).T   # (C_obj, T)
        tboxes_obj_t = t_boxes.astype(jnp.float32).T                          # (4, T)

        if pred_rel_logits is not None:
            sub_logits = pred_sub_logits[-1].reshape(n, -1)
            sub_boxes = pred_sub_boxes[-1].reshape(n, 4)
            rel_logits = pred_rel_logits[-1].reshape(n, -1)
            c_sub = sub_logits.shape[-1]
            c_rel = rel_logits.shape[-1]
            ts_labels = jnp.concatenate(target_sub_labels)
            ts_boxes = jnp.concatenate(target_sub_boxes)
            tr_labels = jnp.concatenate(target_rel_labels)
            onehot_sub_t = jax.nn.one_hot(ts_labels, c_sub, dtype=jnp.float32).T
            onehot_rel_t = jax.nn.one_hot(tr_labels, c_rel, dtype=jnp.float32).T
            tboxes_sub_t = ts_boxes.astype(jnp.float32).T

            # Pack the five narrow-lane row streams into two and fuse the three class
            # matmuls into one K = C_total contraction.
            logits_cat = jnp.concatenate([obj_logits, sub_logits, rel_logits], axis=-1)
            boxes_cat = jnp.concatenate([obj_boxes, sub_boxes], axis=-1)            # (N, 8)
            onehot_cat = jnp.concatenate([onehot_obj_t, onehot_sub_t, onehot_rel_t], axis=0)
            tboxes_cat = jnp.concatenate([tboxes_obj_t, tboxes_sub_t], axis=0)      # (8, T)
            segments = ((0, c_obj, self.cost_obj_class),
                        (c_obj, c_sub, self.cost_obj_class),
                        (c_obj + c_sub, c_rel, self.cost_rel_class))
            box_sets = ((0, 1), (4, 2))     # obj: L1 cdist; sub: L2 cdist (torch default)
        else:
            logits_cat = obj_logits
            boxes_cat = obj_boxes
            onehot_cat = onehot_obj_t
            tboxes_cat = tboxes_obj_t
            segments = ((0, c_obj, self.cost_obj_class),)
            box_sets = ((0, 1),)

        C = _fused_pairwise_cost(logits_cat, boxes_cat, onehot_cat, tboxes_cat,
                                 segments, box_sets,
                                 w_bbox=self.cost_bbox, w_giou=self.cost_giou)
        return C.reshape(bs, nq, -1)

    @staticmethod
    def match_from_cost(C, sizes):
        C = np.asarray(C)
        bs = C.shape[0]
        offsets = np.concatenate([[0], np.cumsum(sizes)]).astype(int)
        out = []
        for i in range(bs):
            c = C[i, :, offsets[i]:offsets[i + 1]]
            ri, cj = _exact_linear_sum_assignment(c)
            out.append((ri.astype(np.int64), cj.astype(np.int64)))
        return out

    def __call__(self, pred_obj_logits, pred_obj_boxes, target_obj_labels, target_obj_boxes, **kw):
        sizes = [int(t.shape[0]) for t in target_obj_labels]
        C = self.compute_cost(pred_obj_logits, pred_obj_boxes,
                              target_obj_labels, target_obj_boxes, **kw)
        C = jax.block_until_ready(C)
        return self.match_from_cost(C, sizes)


# -----------------------------------------------------------------------------
# Pure-JAX reference (mirrors the PyTorch math) used only for verification.
# The kernel streams logits as bf16; the reference applies the same rounding so
# the remaining deviation (approx reciprocals on the EUP, rsqrt, bf16/f32
# accumulation order) stays well within the 2e-2 tolerance — irrelevant for an
# argmin-style assignment.
# -----------------------------------------------------------------------------
def _bf16_round(x):
    return x.astype(jnp.bfloat16).astype(jnp.float32)


def _box_cxcywh_to_xyxy(b):
    cx, cy, w, h = b[..., 0], b[..., 1], b[..., 2], b[..., 3]
    return jnp.stack([cx - 0.5 * w, cy - 0.5 * h, cx + 0.5 * w, cy + 0.5 * h], axis=-1)


def _generalized_box_iou(b1, b2):
    area1 = (b1[:, 2] - b1[:, 0]) * (b1[:, 3] - b1[:, 1])
    area2 = (b2[:, 2] - b2[:, 0]) * (b2[:, 3] - b2[:, 1])
    lt = jnp.maximum(b1[:, None, :2], b2[None, :, :2])
    rb = jnp.minimum(b1[:, None, 2:], b2[None, :, 2:])
    wh = jnp.clip(rb - lt, 0.0)
    inter = wh[..., 0] * wh[..., 1]
    union = area1[:, None] + area2[None, :] - inter
    iou = inter / union
    lt2 = jnp.minimum(b1[:, None, :2], b2[None, :, :2])
    rb2 = jnp.maximum(b1[:, None, 2:], b2[None, :, 2:])
    wh2 = jnp.clip(rb2 - lt2, 0.0)
    enc = wh2[..., 0] * wh2[..., 1]
    return iou - (enc - union) / enc


def _reference_cost(m, pred_obj_logits, pred_obj_boxes, target_obj_labels, target_obj_boxes,
                    pred_sub_logits=None, pred_sub_boxes=None, target_sub_labels=None,
                    target_sub_boxes=None, pred_rel_logits=None, target_rel_labels=None):
    bs, nq = pred_obj_logits.shape[1:3]
    probs_o = jax.nn.softmax(_bf16_round(pred_obj_logits[-1].reshape(bs * nq, -1)), axis=-1)
    pb = pred_obj_boxes[-1].reshape(bs * nq, 4)
    tl = jnp.concatenate(target_obj_labels)
    tb = jnp.concatenate(target_obj_boxes)
    cost_cls = -probs_o[:, tl]
    cost_bbox = jnp.sum(jnp.abs(pb[:, None, :] - tb[None, :, :]), -1)
    cost_giou = -_generalized_box_iou(_box_cxcywh_to_xyxy(pb), _box_cxcywh_to_xyxy(tb))
    C = m.cost_obj_class * cost_cls + m.cost_bbox * cost_bbox + m.cost_giou * cost_giou

    if pred_rel_logits is not None:
        probs_s = jax.nn.softmax(_bf16_round(pred_sub_logits[-1].reshape(bs * nq, -1)), axis=-1)
        psb = pred_sub_boxes[-1].reshape(bs * nq, 4)
        probs_r = jax.nn.softmax(_bf16_round(pred_rel_logits[-1].reshape(bs * nq, -1)), axis=-1)
        tsl = jnp.concatenate(target_sub_labels)
        tsb = jnp.concatenate(target_sub_boxes)
        trl = jnp.concatenate(target_rel_labels)
        cost_sub_cls = -probs_s[:, tsl]
        cost_rel_cls = -probs_r[:, trl]
        cost_sub_bbox = jnp.sqrt(jnp.sum((psb[:, None, :] - tsb[None, :, :]) ** 2, -1))
        cost_sub_giou = -_generalized_box_iou(_box_cxcywh_to_xyxy(psb), _box_cxcywh_to_xyxy(tsb))
        C = C + m.cost_obj_class * cost_sub_cls + m.cost_bbox * cost_sub_bbox + m.cost_giou * cost_sub_giou
        C = C + m.cost_rel_class * cost_rel_cls
    return C.reshape(bs, nq, -1)


# -----------------------------------------------------------------------------
if __name__ == "__main__":
    key = jax.random.PRNGKey(0)
    num_layers, bs, nq = 3, 2, 8
    num_obj_cls, num_rel_cls = 10, 6
    sizes = [3, 5]

    ks = jax.random.split(key, 16)
    pred_obj_logits = jax.random.normal(ks[0], (num_layers, bs, nq, num_obj_cls + 1), jnp.float32)
    pred_obj_boxes = jax.random.uniform(ks[1], (num_layers, bs, nq, 4), jnp.float32, 0.05, 0.45)
    pred_sub_logits = jax.random.normal(ks[2], (num_layers, bs, nq, num_obj_cls + 1), jnp.float32)
    pred_sub_boxes = jax.random.uniform(ks[3], (num_layers, bs, nq, 4), jnp.float32, 0.05, 0.45)
    pred_rel_logits = jax.random.normal(ks[4], (num_layers, bs, nq, num_rel_cls + 1), jnp.float32)

    target_obj_labels = [jax.random.randint(ks[5 + i], (sizes[i],), 0, num_obj_cls) for i in range(bs)]
    target_obj_boxes = [jax.random.uniform(ks[7 + i], (sizes[i], 4), jnp.float32, 0.1, 0.4) for i in range(bs)]
    target_sub_labels = [jax.random.randint(ks[9 + i], (sizes[i],), 0, num_obj_cls) for i in range(bs)]
    target_sub_boxes = [jax.random.uniform(ks[11 + i], (sizes[i], 4), jnp.float32, 0.1, 0.4) for i in range(bs)]
    target_rel_labels = [jax.random.randint(ks[13 + i], (sizes[i],), 0, num_rel_cls) for i in range(bs)]

    matcher = HungarianMatcherPallas(cost_obj_class=1.0, cost_rel_class=1.0,
                                     cost_bbox=5.0, cost_giou=2.0)

    # Full path (obj + sub + rel) — single fused kernel launch, single class matmul.
    C = matcher.compute_cost(
        pred_obj_logits, pred_obj_boxes, target_obj_labels, target_obj_boxes,
        pred_sub_logits=pred_sub_logits, pred_sub_boxes=pred_sub_boxes,
        target_sub_labels=target_sub_labels, target_sub_boxes=target_sub_boxes,
        pred_rel_logits=pred_rel_logits, target_rel_labels=target_rel_labels)
    C = jax.block_until_ready(C)

    C_ref = _reference_cost(
        matcher, pred_obj_logits, pred_obj_boxes, target_obj_labels, target_obj_boxes,
        pred_sub_logits, pred_sub_boxes, target_sub_labels, target_sub_boxes,
        pred_rel_logits, target_rel_labels)
    np.testing.assert_allclose(np.asarray(C), np.asarray(C_ref), rtol=2e-2, atol=2e-2)

    # Obj-only path (rel branch absent), exercises the single-segment kernel variant.
    C_obj = matcher.compute_cost(pred_obj_logits, pred_obj_boxes,
                                 target_obj_labels, target_obj_boxes)
    C_obj = jax.block_until_ready(C_obj)
    C_obj_ref = _reference_cost(matcher, pred_obj_logits, pred_obj_boxes,
                                target_obj_labels, target_obj_boxes)
    np.testing.assert_allclose(np.asarray(C_obj), np.asarray(C_obj_ref), rtol=2e-2, atol=2e-2)

    indices = matcher.match_from_cost(C, sizes)
    for b, (i, j) in enumerate(indices):
        assert len(i) == len(j) == min(nq, sizes[b])

    print("KERNEL_OK")
</pallas_src>

<mosaic_0001>
module attributes {stable_mosaic.version = 11 : i64} {
  func.func @kernel(%arg0: i32, %arg1: i32, %arg2: memref<16x29xbf16, #tpu.memory_space<vmem>>, %arg3: memref<16x8xf32, #tpu.memory_space<vmem>>, %arg4: memref<29x128xf32, #tpu.memory_space<vmem>>, %arg5: memref<8x128xf32, #tpu.memory_space<vmem>>, %arg6: memref<16x128xf32, #tpu.memory_space<vmem>>) attributes {dimension_semantics = [#tpu.dimension_semantics<parallel>, #tpu.dimension_semantics<parallel>], iteration_bounds = array<i64: 1, 1>, scalar_prefetch = 0 : i64, scratch_operands = 0 : i64, tpu.core_type = #tpu.core_type<tc>, window_params = [{transform_indices = @transform_0, window_bounds = array<i64: 16, 29>}, {transform_indices = @transform_1, window_bounds = array<i64: 16, 8>}, {transform_indices = @transform_2, window_bounds = array<i64: 29, 128>}, {transform_indices = @transform_3, window_bounds = array<i64: 8, 128>}, {transform_indices = @transform_4, window_bounds = array<i64: 16, 128>}]} {
    %c0 = arith.constant 0 : index
    %c0_0 = arith.constant 0 : index
    %0 = vector.load %arg2[%c0, %c0_0] : memref<16x29xbf16, #tpu.memory_space<vmem>>, vector<16x29xbf16>
    %1 = arith.extf %0 : vector<16x29xbf16> to vector<16x29xf32>
    %2 = tpu.iota {dimensions = array<i32: 1>} : vector<16x29xi32>
    %c0_i32 = arith.constant 0 : i32
    %3 = vector.broadcast %c0_i32 : i32 to vector<16x29xi32>
    %4 = arith.cmpi sge, %2, %3 : vector<16x29xi32>
    %c11_i32 = arith.constant 11 : i32
    %5 = vector.broadcast %c11_i32 : i32 to vector<16x29xi32>
    %6 = arith.cmpi slt, %2, %5 : vector<16x29xi32>
    %7 = arith.andi %4, %6 : vector<16x29xi1>
    %c11_i32_1 = arith.constant 11 : i32
    %8 = vector.broadcast %c11_i32_1 : i32 to vector<16x29xi32>
    %9 = arith.cmpi sge, %2, %8 : vector<16x29xi32>
    %c22_i32 = arith.constant 22 : i32
    %10 = vector.broadcast %c22_i32 : i32 to vector<16x29xi32>
    %11 = arith.cmpi slt, %2, %10 : vector<16x29xi32>
    %12 = arith.andi %9, %11 : vector<16x29xi1>
    %c22_i32_2 = arith.constant 22 : i32
    %13 = vector.broadcast %c22_i32_2 : i32 to vector<16x29xi32>
    %14 = arith.cmpi sge, %2, %13 : vector<16x29xi32>
    %c29_i32 = arith.constant 29 : i32
    %15 = vector.broadcast %c29_i32 : i32 to vector<16x29xi32>
    %16 = arith.cmpi slt, %2, %15 : vector<16x29xi32>
    %17 = arith.andi %14, %16 : vector<16x29xi1>
    %cst = arith.constant 0.000000e+00 : f32
    %18 = vector.broadcast %cst : f32 to vector<16x29xf32>
    %cst_3 = arith.constant 0xFF800000 : f32
    %19 = vector.broadcast %cst_3 : f32 to vector<16x29xf32>
    %20 = arith.select %7, %1, %19 : vector<16x29xi1>, vector<16x29xf32>
    %cst_4 = arith.constant dense<0xFF800000> : vector<16xf32>
    %21 = vector.multi_reduction <maximumf>, %20, %cst_4 [1] : vector<16x29xf32> to vector<16xf32>
    %22 = vector.shape_cast %21 : vector<16xf32> to vector<16x1xf32>
    %23 = vector.shape_cast %22 : vector<16x1xf32> to vector<16x1xf32>
    %24 = vector.broadcast %23 : vector<16x1xf32> to vector<16x29xf32>
    %25 = arith.select %7, %24, %18 : vector<16x29xi1>, vector<16x29xf32>
    %cst_5 = arith.constant 0xFF800000 : f32
    %26 = vector.broadcast %cst_5 : f32 to vector<16x29xf32>
    %27 = arith.select %12, %1, %26 : vector<16x29xi1>, vector<16x29xf32>
    %cst_6 = arith.constant dense<0xFF800000> : vector<16xf32>
    %28 = vector.multi_reduction <maximumf>, %27, %cst_6 [1] : vector<16x29xf32> to vector<16xf32>
    %29 = vector.shape_cast %28 : vector<16xf32> to vector<16x1xf32>
    %30 = vector.shape_cast %29 : vector<16x1xf32> to vector<16x1xf32>
    %31 = vector.broadcast %30 : vector<16x1xf32> to vector<16x29xf32>
    %32 = arith.select %12, %31, %25 : vector<16x29xi1>, vector<16x29xf32>
    %cst_7 = arith.constant 0xFF800000 : f32
    %33 = vector.broadcast %cst_7 : f32 to vector<16x29xf32>
    %34 = arith.select %17, %1, %33 : vector<16x29xi1>, vector<16x29xf32>
    %cst_8 = arith.constant dense<0xFF800000> : vector<16xf32>
    %35 = vector.multi_reduction <maximumf>, %34, %cst_8 [1] : vector<16x29xf32> to vector<16xf32>
    %36 = vector.shape_cast %35 : vector<16xf32> to vector<16x1xf32>
    %37 = vector.shape_cast %36 : vector<16x1xf32> to vector<16x1xf32>
    %38 = vector.broadcast %37 : vector<16x1xf32> to vector<16x29xf32>
    %39 = arith.select %17, %38, %32 : vector<16x29xi1>, vector<16x29xf32>
    %40 = arith.subf %1, %39 : vector<16x29xf32>
    %41 = math.exp %40 : vector<16x29xf32>
    %cst_9 = arith.constant 0.000000e+00 : f32
    %42 = vector.broadcast %cst_9 : f32 to vector<16x29xf32>
    %cst_10 = arith.constant 0.000000e+00 : f32
    %43 = vector.broadcast %cst_10 : f32 to vector<16x29xf32>
    %44 = arith.select %7, %41, %43 : vector<16x29xi1>, vector<16x29xf32>
    %cst_11 = arith.constant dense<0.000000e+00> : vector<16xf32>
    %45 = vector.multi_reduction <add>, %44, %cst_11 [1] : vector<16x29xf32> to vector<16xf32>
    %46 = vector.shape_cast %45 : vector<16xf32> to vector<16x1xf32>
    %47 = tpu.reciprocal %46 {approx = true} : vector<16x1xf32> -> vector<16x1xf32>
    %cst_12 = arith.constant -1.000000e+00 : f32
    %48 = vector.broadcast %cst_12 : f32 to vector<16x1xf32>
    %49 = arith.mulf %48, %47 : vector<16x1xf32>
    %50 = vector.shape_cast %49 : vector<16x1xf32> to vector<16x1xf32>
    %51 = vector.broadcast %50 : vector<16x1xf32> to vector<16x29xf32>
    %52 = arith.select %7, %51, %42 : vector<16x29xi1>, vector<16x29xf32>
    %cst_13 = arith.constant 0.000000e+00 : f32
    %53 = vector.broadcast %cst_13 : f32 to vector<16x29xf32>
    %54 = arith.select %12, %41, %53 : vector<16x29xi1>, vector<16x29xf32>
    %cst_14 = arith.constant dense<0.000000e+00> : vector<16xf32>
    %55 = vector.multi_reduction <add>, %54, %cst_14 [1] : vector<16x29xf32> to vector<16xf32>
    %56 = vector.shape_cast %55 : vector<16xf32> to vector<16x1xf32>
    %57 = tpu.reciprocal %56 {approx = true} : vector<16x1xf32> -> vector<16x1xf32>
    %cst_15 = arith.constant -1.000000e+00 : f32
    %58 = vector.broadcast %cst_15 : f32 to vector<16x1xf32>
    %59 = arith.mulf %58, %57 : vector<16x1xf32>
    %60 = vector.shape_cast %59 : vector<16x1xf32> to vector<16x1xf32>
    %61 = vector.broadcast %60 : vector<16x1xf32> to vector<16x29xf32>
    %62 = arith.select %12, %61, %52 : vector<16x29xi1>, vector<16x29xf32>
    %cst_16 = arith.constant 0.000000e+00 : f32
    %63 = vector.broadcast %cst_16 : f32 to vector<16x29xf32>
    %64 = arith.select %17, %41, %63 : vector<16x29xi1>, vector<16x29xf32>
    %cst_17 = arith.constant dense<0.000000e+00> : vector<16xf32>
    %65 = vector.multi_reduction <add>, %64, %cst_17 [1] : vector<16x29xf32> to vector<16xf32>
    %66 = vector.shape_cast %65 : vector<16xf32> to vector<16x1xf32>
    %67 = tpu.reciprocal %66 {approx = true} : vector<16x1xf32> -> vector<16x1xf32>
    %cst_18 = arith.constant -1.000000e+00 : f32
    %68 = vector.broadcast %cst_18 : f32 to vector<16x1xf32>
    %69 = arith.mulf %68, %67 : vector<16x1xf32>
    %70 = vector.shape_cast %69 : vector<16x1xf32> to vector<16x1xf32>
    %71 = vector.broadcast %70 : vector<16x1xf32> to vector<16x29xf32>
    %72 = arith.select %17, %71, %62 : vector<16x29xi1>, vector<16x29xf32>
    %73 = arith.mulf %41, %72 : vector<16x29xf32>
    %c0_19 = arith.constant 0 : index
    %c0_20 = arith.constant 0 : index
    %74 = vector.load %arg4[%c0_19, %c0_20] : memref<29x128xf32, #tpu.memory_space<vmem>>, vector<29x128xf32>
    %cst_21 = arith.constant dense<0.000000e+00> : vector<16x128xf32>
    %75 = tpu.matmul %73, %74, %cst_21 {dimension_numbers = #tpu.dot_dimension_numbers<[1], [0], [0], [1], [0, 0, 1, 1], [], []>} : vector<16x29xf32>, vector<29x128xf32>, vector<16x128xf32> -> vector<16x128xf32>
    %c0_22 = arith.constant 0 : index
    %c0_23 = arith.constant 0 : index
    %76 = vector.load %arg3[%c0_22, %c0_23] : memref<16x8xf32, #tpu.memory_space<vmem>>, vector<16x8xf32>
    %c0_24 = arith.constant 0 : index
    %c0_25 = arith.constant 0 : index
    %77 = vector.load %arg5[%c0_24, %c0_25] : memref<8x128xf32, #tpu.memory_space<vmem>>, vector<8x128xf32>
    %78 = vector.extract_strided_slice %76 {offsets = [0, 0], sizes = [16, 1], strides = [1, 1]} : vector<16x8xf32> to vector<16x1xf32>
    %79 = vector.extract_strided_slice %76 {offsets = [0, 1], sizes = [16, 1], strides = [1, 1]} : vector<16x8xf32> to vector<16x1xf32>
    %80 = vector.extract_strided_slice %76 {offsets = [0, 2], sizes = [16, 1], strides = [1, 1]} : vector<16x8xf32> to vector<16x1xf32>
    %81 = vector.extract_strided_slice %76 {offsets = [0, 3], sizes = [16, 1], strides = [1, 1]} : vector<16x8xf32> to vector<16x1xf32>
    %82 = vector.extract_strided_slice %77 {offsets = [0, 0], sizes = [1, 128], strides = [1, 1]} : vector<8x128xf32> to vector<1x128xf32>
    %83 = vector.extract_strided_slice %77 {offsets = [1, 0], sizes = [1, 128], strides = [1, 1]} : vector<8x128xf32> to vector<1x128xf32>
    %84 = vector.extract_strided_slice %77 {offsets = [2, 0], sizes = [1, 128], strides = [1, 1]} : vector<8x128xf32> to vector<1x128xf32>
    %85 = vector.extract_strided_slice %77 {offsets = [3, 0], sizes = [1, 128], strides = [1, 1]} : vector<8x128xf32> to vector<1x128xf32>
    %86 = vector.broadcast %78 : vector<16x1xf32> to vector<16x128xf32>
    %87 = vector.broadcast %82 : vector<1x128xf32> to vector<16x128xf32>
    %88 = arith.subf %86, %87 : vector<16x128xf32>
    %89 = vector.broadcast %79 : vector<16x1xf32> to vector<16x128xf32>
    %90 = vector.broadcast %83 : vector<1x128xf32> to vector<16x128xf32>
    %91 = arith.subf %89, %90 : vector<16x128xf32>
    %92 = vector.broadcast %80 : vector<16x1xf32> to vector<16x128xf32>
    %93 = vector.broadcast %84 : vector<1x128xf32> to vector<16x128xf32>
    %94 = arith.subf %92, %93 : vector<16x128xf32>
    %95 = vector.broadcast %81 : vector<16x1xf32> to vector<16x128xf32>
    %96 = vector.broadcast %85 : vector<1x128xf32> to vector<16x128xf32>
    %97 = arith.subf %95, %96 : vector<16x128xf32>
    %98 = math.absf %88 : vector<16x128xf32>
    %99 = math.absf %91 : vector<16x128xf32>
    %100 = arith.addf %98, %99 : vector<16x128xf32>
    %101 = math.absf %94 : vector<16x128xf32>
    %102 = arith.addf %100, %101 : vector<16x128xf32>
    %103 = math.absf %97 : vector<16x128xf32>
    %104 = arith.addf %102, %103 : vector<16x128xf32>
    %cst_26 = arith.constant 5.000000e+00 : f32
    %105 = vector.broadcast %cst_26 : f32 to vector<16x128xf32>
    %106 = arith.mulf %105, %104 : vector<16x128xf32>
    %107 = arith.addf %75, %106 : vector<16x128xf32>
    %cst_27 = arith.constant 5.000000e-01 : f32
    %108 = vector.broadcast %cst_27 : f32 to vector<16x1xf32>
    %109 = arith.mulf %108, %80 : vector<16x1xf32>
    %110 = arith.subf %78, %109 : vector<16x1xf32>
    %cst_28 = arith.constant 5.000000e-01 : f32
    %111 = vector.broadcast %cst_28 : f32 to vector<16x1xf32>
    %112 = arith.mulf %111, %81 : vector<16x1xf32>
    %113 = arith.subf %79, %112 : vector<16x1xf32>
    %cst_29 = arith.constant 5.000000e-01 : f32
    %114 = vector.broadcast %cst_29 : f32 to vector<16x1xf32>
    %115 = arith.mulf %114, %80 : vector<16x1xf32>
    %116 = arith.addf %78, %115 : vector<16x1xf32>
    %cst_30 = arith.constant 5.000000e-01 : f32
    %117 = vector.broadcast %cst_30 : f32 to vector<16x1xf32>
    %118 = arith.mulf %117, %81 : vector<16x1xf32>
    %119 = arith.addf %79, %118 : vector<16x1xf32>
    %cst_31 = arith.constant 5.000000e-01 : f32
    %120 = vector.broadcast %cst_31 : f32 to vector<1x128xf32>
    %121 = arith.mulf %120, %84 : vector<1x128xf32>
    %122 = arith.subf %82, %121 : vector<1x128xf32>
    %cst_32 = arith.constant 5.000000e-01 : f32
    %123 = vector.broadcast %cst_32 : f32 to vector<1x128xf32>
    %124 = arith.mulf %123, %85 : vector<1x128xf32>
    %125 = arith.subf %83, %124 : vector<1x128xf32>
    %cst_33 = arith.constant 5.000000e-01 : f32
    %126 = vector.broadcast %cst_33 : f32 to vector<1x128xf32>
    %127 = arith.mulf %126, %84 : vector<1x128xf32>
    %128 = arith.addf %82, %127 : vector<1x128xf32>
    %cst_34 = arith.constant 5.000000e-01 : f32
    %129 = vector.broadcast %cst_34 : f32 to vector<1x128xf32>
    %130 = arith.mulf %129, %85 : vector<1x128xf32>
    %131 = arith.addf %83, %130 : vector<1x128xf32>
    %132 = arith.subf %116, %110 : vector<16x1xf32>
    %133 = arith.subf %119, %113 : vector<16x1xf32>
    %134 = arith.mulf %132, %133 : vector<16x1xf32>
    %135 = arith.subf %128, %122 : vector<1x128xf32>
    %136 = arith.subf %131, %125 : vector<1x128xf32>
    %137 = arith.mulf %135, %136 : vector<1x128xf32>
    %138 = vector.broadcast %116 : vector<16x1xf32> to vector<16x128xf32>
    %139 = vector.broadcast %128 : vector<1x128xf32> to vector<16x128xf32>
    %140 = arith.minimumf %138, %139 : vector<16x128xf32>
    %141 = vector.broadcast %110 : vector<16x1xf32> to vector<16x128xf32>
    %142 = vector.broadcast %122 : vector<1x128xf32> to vector<16x128xf32>
    %143 = arith.maximumf %141, %142 : vector<16x128xf32>
    %144 = arith.subf %140, %143 : vector<16x128xf32>
    %cst_35 = arith.constant 0.000000e+00 : f32
    %145 = vector.broadcast %cst_35 : f32 to vector<16x128xf32>
    %146 = arith.maximumf %144, %145 : vector<16x128xf32>
    %147 = vector.broadcast %119 : vector<16x1xf32> to vector<16x128xf32>
    %148 = vector.broadcast %131 : vector<1x128xf32> to vector<16x128xf32>
    %149 = arith.minimumf %147, %148 : vector<16x128xf32>
    %150 = vector.broadcast %113 : vector<16x1xf32> to vector<16x128xf32>
    %151 = vector.broadcast %125 : vector<1x128xf32> to vector<16x128xf32>
    %152 = arith.maximumf %150, %151 : vector<16x128xf32>
    %153 = arith.subf %149, %152 : vector<16x128xf32>
    %cst_36 = arith.constant 0.000000e+00 : f32
    %154 = vector.broadcast %cst_36 : f32 to vector<16x128xf32>
    %155 = arith.maximumf %153, %154 : vector<16x128xf32>
    %156 = arith.mulf %146, %155 : vector<16x128xf32>
    %157 = vector.broadcast %134 : vector<16x1xf32> to vector<16x128xf32>
    %158 = vector.broadcast %137 : vector<1x128xf32> to vector<16x128xf32>
    %159 = arith.addf %157, %158 : vector<16x128xf32>
    %160 = arith.subf %159, %156 : vector<16x128xf32>
    %cst_37 = arith.constant 9.99999971E-10 : f32
    %161 = vector.broadcast %cst_37 : f32 to vector<16x128xf32>
    %162 = arith.maximumf %160, %161 : vector<16x128xf32>
    %163 = tpu.reciprocal %162 {approx = true} : vector<16x128xf32> -> vector<16x128xf32>
    %164 = arith.mulf %156, %163 : vector<16x128xf32>
    %165 = vector.broadcast %116 : vector<16x1xf32> to vector<16x128xf32>
    %166 = vector.broadcast %128 : vector<1x128xf32> to vector<16x128xf32>
    %167 = arith.maximumf %165, %166 : vector<16x128xf32>
    %168 = vector.broadcast %110 : vector<16x1xf32> to vector<16x128xf32>
    %169 = vector.broadcast %122 : vector<1x128xf32> to vector<16x128xf32>
    %170 = arith.minimumf %168, %169 : vector<16x128xf32>
    %171 = arith.subf %167, %170 : vector<16x128xf32>
    %cst_38 = arith.constant 0.000000e+00 : f32
    %172 = vector.broadcast %cst_38 : f32 to vector<16x128xf32>
    %173 = arith.maximumf %171, %172 : vector<16x128xf32>
    %174 = vector.broadcast %119 : vector<16x1xf32> to vector<16x128xf32>
    %175 = vector.broadcast %131 : vector<1x128xf32> to vector<16x128xf32>
    %176 = arith.maximumf %174, %175 : vector<16x128xf32>
    %177 = vector.broadcast %113 : vector<16x1xf32> to vector<16x128xf32>
    %178 = vector.broadcast %125 : vector<1x128xf32> to vector<16x128xf32>
    %179 = arith.minimumf %177, %178 : vector<16x128xf32>
    %180 = arith.subf %176, %179 : vector<16x128xf32>
    %cst_39 = arith.constant 0.000000e+00 : f32
    %181 = vector.broadcast %cst_39 : f32 to vector<16x128xf32>
    %182 = arith.maximumf %180, %181 : vector<16x128xf32>
    %183 = arith.mulf %173, %182 : vector<16x128xf32>
    %cst_40 = arith.constant 9.99999971E-10 : f32
    %184 = vector.broadcast %cst_40 : f32 to vector<16x128xf32>
    %185 = arith.maximumf %183, %184 : vector<16x128xf32>
    %186 = tpu.reciprocal %185 {approx = true} : vector<16x128xf32> -> vector<16x128xf32>
    %187 = arith.subf %183, %160 : vector<16x128xf32>
    %188 = arith.mulf %187, %186 : vector<16x128xf32>
    %189 = arith.subf %164, %188 : vector<16x128xf32>
    %cst_41 = arith.constant -2.000000e+00 : f32
    %190 = vector.broadcast %cst_41 : f32 to vector<16x128xf32>
    %191 = arith.mulf %190, %189 : vector<16x128xf32>
    %192 = arith.addf %107, %191 : vector<16x128xf32>
    %193 = vector.extract_strided_slice %76 {offsets = [0, 4], sizes = [16, 1], strides = [1, 1]} : vector<16x8xf32> to vector<16x1xf32>
    %194 = vector.extract_strided_slice %76 {offsets = [0, 5], sizes = [16, 1], strides = [1, 1]} : vector<16x8xf32> to vector<16x1xf32>
    %195 = vector.extract_strided_slice %76 {offsets = [0, 6], sizes = [16, 1], strides = [1, 1]} : vector<16x8xf32> to vector<16x1xf32>
    %196 = vector.extract_strided_slice %76 {offsets = [0, 7], sizes = [16, 1], strides = [1, 1]} : vector<16x8xf32> to vector<16x1xf32>
    %197 = vector.extract_strided_slice %77 {offsets = [4, 0], sizes = [1, 128], strides = [1, 1]} : vector<8x128xf32> to vector<1x128xf32>
    %198 = vector.extract_strided_slice %77 {offsets = [5, 0], sizes = [1, 128], strides = [1, 1]} : vector<8x128xf32> to vector<1x128xf32>
    %199 = vector.extract_strided_slice %77 {offsets = [6, 0], sizes = [1, 128], strides = [1, 1]} : vector<8x128xf32> to vector<1x128xf32>
    %200 = vector.extract_strided_slice %77 {offsets = [7, 0], sizes = [1, 128], strides = [1, 1]} : vector<8x128xf32> to vector<1x128xf32>
    %201 = vector.broadcast %193 : vector<16x1xf32> to vector<16x128xf32>
    %202 = vector.broadcast %197 : vector<1x128xf32> to vector<16x128xf32>
    %203 = arith.subf %201, %202 : vector<16x128xf32>
    %204 = vector.broadcast %194 : vector<16x1xf32> to vector<16x128xf32>
    %205 = vector.broadcast %198 : vector<1x128xf32> to vector<16x128xf32>
    %206 = arith.subf %204, %205 : vector<16x128xf32>
    %207 = vector.broadcast %195 : vector<16x1xf32> to vector<16x128xf32>
    %208 = vector.broadcast %199 : vector<1x128xf32> to vector<16x128xf32>
    %209 = arith.subf %207, %208 : vector<16x128xf32>
    %210 = vector.broadcast %196 : vector<16x1xf32> to vector<16x128xf32>
    %211 = vector.broadcast %200 : vector<1x128xf32> to vector<16x128xf32>
    %212 = arith.subf %210, %211 : vector<16x128xf32>
    %213 = arith.mulf %203, %203 : vector<16x128xf32>
    %214 = arith.mulf %206, %206 : vector<16x128xf32>
    %215 = arith.addf %213, %214 : vector<16x128xf32>
    %216 = arith.mulf %209, %209 : vector<16x128xf32>
    %217 = arith.addf %215, %216 : vector<16x128xf32>
    %218 = arith.mulf %212, %212 : vector<16x128xf32>
    %219 = arith.addf %217, %218 : vector<16x128xf32>
    %cst_42 = arith.constant 9.99999968E-21 : f32
    %220 = vector.broadcast %cst_42 : f32 to vector<16x128xf32>
    %221 = arith.maximumf %219, %220 : vector<16x128xf32>
    %222 = math.rsqrt %221 : vector<16x128xf32>
    %223 = arith.mulf %219, %222 : vector<16x128xf32>
    %cst_43 = arith.constant 5.000000e+00 : f32
    %224 = vector.broadcast %cst_43 : f32 to vector<16x128xf32>
    %225 = arith.mulf %224, %223 : vector<16x128xf32>
    %226 = arith.addf %192, %225 : vector<16x128xf32>
    %cst_44 = arith.constant 5.000000e-01 : f32
    %227 = vector.broadcast %cst_44 : f32 to vector<16x1xf32>
    %228 = arith.mulf %227, %195 : vector<16x1xf32>
    %229 = arith.subf %193, %228 : vector<16x1xf32>
    %cst_45 = arith.constant 5.000000e-01 : f32
    %230 = vector.broadcast %cst_45 : f32 to vector<16x1xf32>
    %231 = arith.mulf %230, %196 : vector<16x1xf32>
    %232 = arith.subf %194, %231 : vector<16x1xf32>
    %cst_46 = arith.constant 5.000000e-01 : f32
    %233 = vector.broadcast %cst_46 : f32 to vector<16x1xf32>
    %234 = arith.mulf %233, %195 : vector<16x1xf32>
    %235 = arith.addf %193, %234 : vector<16x1xf32>
    %cst_47 = arith.constant 5.000000e-01 : f32
    %236 = vector.broadcast %cst_47 : f32 to vector<16x1xf32>
    %237 = arith.mulf %236, %196 : vector<16x1xf32>
    %238 = arith.addf %194, %237 : vector<16x1xf32>
    %cst_48 = arith.constant 5.000000e-01 : f32
    %239 = vector.broadcast %cst_48 : f32 to vector<1x128xf32>
    %240 = arith.mulf %239, %199 : vector<1x128xf32>
    %241 = arith.subf %197, %240 : vector<1x128xf32>
    %cst_49 = arith.constant 5.000000e-01 : f32
    %242 = vector.broadcast %cst_49 : f32 to vector<1x128xf32>
    %243 = arith.mulf %242, %200 : vector<1x128xf32>
    %244 = arith.subf %198, %243 : vector<1x128xf32>
    %cst_50 = arith.constant 5.000000e-01 : f32
    %245 = vector.broadcast %cst_50 : f32 to vector<1x128xf32>
    %246 = arith.mulf %245, %199 : vector<1x128xf32>
    %247 = arith.addf %197, %246 : vector<1x128xf32>
    %cst_51 = arith.constant 5.000000e-01 : f32
    %248 = vector.broadcast %cst_51 : f32 to vector<1x128xf32>
    %249 = arith.mulf %248, %200 : vector<1x128xf32>
    %250 = arith.addf %198, %249 : vector<1x128xf32>
    %251 = arith.subf %235, %229 : vector<16x1xf32>
    %252 = arith.subf %238, %232 : vector<16x1xf32>
    %253 = arith.mulf %251, %252 : vector<16x1xf32>
    %254 = arith.subf %247, %241 : vector<1x128xf32>
    %255 = arith.subf %250, %244 : vector<1x128xf32>
    %256 = arith.mulf %254, %255 : vector<1x128xf32>
    %257 = vector.broadcast %235 : vector<16x1xf32> to vector<16x128xf32>
    %258 = vector.broadcast %247 : vector<1x128xf32> to vector<16x128xf32>
    %259 = arith.minimumf %257, %258 : vector<16x128xf32>
    %260 = vector.broadcast %229 : vector<16x1xf32> to vector<16x128xf32>
    %261 = vector.broadcast %241 : vector<1x128xf32> to vector<16x128xf32>
    %262 = arith.maximumf %260, %261 : vector<16x128xf32>
    %263 = arith.subf %259, %262 : vector<16x128xf32>
    %cst_52 = arith.constant 0.000000e+00 : f32
    %264 = vector.broadcast %cst_52 : f32 to vector<16x128xf32>
    %265 = arith.maximumf %263, %264 : vector<16x128xf32>
    %266 = vector.broadcast %238 : vector<16x1xf32> to vector<16x128xf32>
    %267 = vector.broadcast %250 : vector<1x128xf32> to vector<16x128xf32>
    %268 = arith.minimumf %266, %267 : vector<16x128xf32>
    %269 = vector.broadcast %232 : vector<16x1xf32> to vector<16x128xf32>
    %270 = vector.broadcast %244 : vector<1x128xf32> to vector<16x128xf32>
    %271 = arith.maximumf %269, %270 : vector<16x128xf32>
    %272 = arith.subf %268, %271 : vector<16x128xf32>
    %cst_53 = arith.constant 0.000000e+00 : f32
    %273 = vector.broadcast %cst_53 : f32 to vector<16x128xf32>
    %274 = arith.maximumf %272, %273 : vector<16x128xf32>
    %275 = arith.mulf %265, %274 : vector<16x128xf32>
    %276 = vector.broadcast %253 : vector<16x1xf32> to vector<16x128xf32>
    %277 = vector.broadcast %256 : vector<1x128xf32> to vector<16x128xf32>
    %278 = arith.addf %276, %277 : vector<16x128xf32>
    %279 = arith.subf %278, %275 : vector<16x128xf32>
    %cst_54 = arith.constant 9.99999971E-10 : f32
    %280 = vector.broadcast %cst_54 : f32 to vector<16x128xf32>
    %281 = arith.maximumf %279, %280 : vector<16x128xf32>
    %282 = tpu.reciprocal %281 {approx = true} : vector<16x128xf32> -> vector<16x128xf32>
    %283 = arith.mulf %275, %282 : vector<16x128xf32>
    %284 = vector.broadcast %235 : vector<16x1xf32> to vector<16x128xf32>
    %285 = vector.broadcast %247 : vector<1x128xf32> to vector<16x128xf32>
    %286 = arith.maximumf %284, %285 : vector<16x128xf32>
    %287 = vector.broadcast %229 : vector<16x1xf32> to vector<16x128xf32>
    %288 = vector.broadcast %241 : vector<1x128xf32> to vector<16x128xf32>
    %289 = arith.minimumf %287, %288 : vector<16x128xf32>
    %290 = arith.subf %286, %289 : vector<16x128xf32>
    %cst_55 = arith.constant 0.000000e+00 : f32
    %291 = vector.broadcast %cst_55 : f32 to vector<16x128xf32>
    %292 = arith.maximumf %290, %291 : vector<16x128xf32>
    %293 = vector.broadcast %238 : vector<16x1xf32> to vector<16x128xf32>
    %294 = vector.broadcast %250 : vector<1x128xf32> to vector<16x128xf32>
    %295 = arith.maximumf %293, %294 : vector<16x128xf32>
    %296 = vector.broadcast %232 : vector<16x1xf32> to vector<16x128xf32>
    %297 = vector.broadcast %244 : vector<1x128xf32> to vector<16x128xf32>
    %298 = arith.minimumf %296, %297 : vector<16x128xf32>
    %299 = arith.subf %295, %298 : vector<16x128xf32>
    %cst_56 = arith.constant 0.000000e+00 : f32
    %300 = vector.broadcast %cst_56 : f32 to vector<16x128xf32>
    %301 = arith.maximumf %299, %300 : vector<16x128xf32>
    %302 = arith.mulf %292, %301 : vector<16x128xf32>
    %cst_57 = arith.constant 9.99999971E-10 : f32
    %303 = vector.broadcast %cst_57 : f32 to vector<16x128xf32>
    %304 = arith.maximumf %302, %303 : vector<16x128xf32>
    %305 = tpu.reciprocal %304 {approx = true} : vector<16x128xf32> -> vector<16x128xf32>
    %306 = arith.subf %302, %279 : vector<16x128xf32>
    %307 = arith.mulf %306, %305 : vector<16x128xf32>
    %308 = arith.subf %283, %307 : vector<16x128xf32>
    %cst_58 = arith.constant -2.000000e+00 : f32
    %309 = vector.broadcast %cst_58 : f32 to vector<16x128xf32>
    %310 = arith.mulf %309, %308 : vector<16x128xf32>
    %311 = arith.addf %226, %310 : vector<16x128xf32>
    %c0_59 = arith.constant 0 : index
    %c0_60 = arith.constant 0 : index
    %312 = vector.load %arg6[%c0_59, %c0_60] : memref<16x128xf32, #tpu.memory_space<vmem>>, vector<16x128xf32>
    tpu.vector_store %arg6[%c0_59, %c0_60], %311 {strides = array<i32>} : memref<16x128xf32, #tpu.memory_space<vmem>>, vector<16x128xf32>,
    return
  }
  func.func @transform_0(%arg0: i32, %arg1: i32) -> (i32, i32) {
    %c0_i32 = arith.constant 0 : i32
    %c0_i32_0 = arith.constant 0 : i32
    return %arg0, %c0_i32 : i32, i32
  }
  func.func @transform_1(%arg0: i32, %arg1: i32) -> (i32, i32) {
    %c0_i32 = arith.constant 0 : i32
    %c0_i32_0 = arith.constant 0 : i32
    return %arg0, %c0_i32 : i32, i32
  }
  func.func @transform_2(%arg0: i32, %arg1: i32) -> (i32, i32) {
    %c0_i32 = arith.constant 0 : i32
    %c0_i32_0 = arith.constant 0 : i32
    return %c0_i32, %arg1 : i32, i32
  }
  func.func @transform_3(%arg0: i32, %arg1: i32) -> (i32, i32) {
    %c0_i32 = arith.constant 0 : i32
    %c0_i32_0 = arith.constant 0 : i32
    return %c0_i32, %arg1 : i32, i32
  }
  func.func @transform_4(%arg0: i32, %arg1: i32) -> (i32, i32) {
    %c0_i32 = arith.constant 0 : i32
    return %arg0, %arg1 : i32, i32
  }
}

</mosaic_0001>

<bundles_post_ra>
// kernel: tpu_custom_call.1
= control target key start
LH: loop header
LB: loop body
LE: loop exit
PB: predicated region body
PF: predicated region fallthrough
CT: control target
= control target key end

     0   :  { %9 = vsyncpa [#allocation3], 0  ;;  %s1143_s0 = inlined_call_operand.vmem [shape: bf16[16,29], index: 0, kind: input, shape index: {}]   ;;  %s1144_s1 = inlined_call_operand.vmem [shape: f32[16,8], index: 1, kind: input, shape index: {}]   ;;  %s1145_s2 = inlined_call_operand.hbm [shape: f32[29,128], index: 2, kind: input, shape index: {}]   ;;  %s1146_s3 = inlined_call_operand.vmem [shape: f32[8,128], index: 3, kind: input, shape index: {}]   ;;  %s1147_s4 = inlined_call_operand.hbm [shape: f32[16,128], index: 4, kind: output, shape index: {}]  }
   0x1   :  { %10 = vsyncpa [#allocation4], 0  ;;  %s19_s17 = sshll.u32 %s1145_s2, 4  ;;  %s735_s18 = smov [#allocation2]   ;;  %s20_s17 = int_to_ptr.hbm [resolvable:$true] %s19_s17 }
   0x2   :  { %s21_s19 = sshll.u32 %s735_s18, 4  ;;  %s736_s20 = smov 128   ;;  %s22_s19 = int_to_ptr.vmem [resolvable:$true] %s21_s19 }
   0x3   :  { %s737_s21 = smov 8  }
   0x4   :  { %27 = dma.hbm_to_vmem [thread:$0]  %s20_s17, 512, %s22_s19, [#allocation3], %s736_s20, %s736_s20, %s737_s21  }
   0x5   :  { %731 = dma.done.wait [#allocation3], 512  }
   0x6   :  { %732 = vsyncadd [#allocation3], 4294966784  ;;  %v38_v0 = vlaneseq  ;;  %v738_v1 = vmov 1   ;;  %v596_v4 = vld [vmem:[%s1143_s0] sm:$0xff]   ;;  %vm51_vm7 = vcmask 236544   ;;  %v739_v16 = vmov 0  }
   0x7   :  { %618 = vset.pattern.permute.xlu2 %v738_v1  ;;  %v597_v6 = vunpack.c.l.bf16 %v596_v4  ;;  %v598_v10 = vunpack.c.h.bf16 %v596_v4  ;;  %617 = vset.pattern.permute.xlu1 %v739_v16  ;;  %v740_v21 = vmov 3   ;;  %v821_v22 = vld [vmem:[%s1144_s1 + $0x8] sm:$0xff]  ;;  %v827_v23 = vld [vmem:[%s1144_s1] sm:$0xff]  ;;  %v741_v24 = vmov 2   ;;  %s743_s27 = smov 127   ;;  %s748_s28 = smov [#allocation5]  }
   0x8   :  { %v781_v2 = vand.u32 127, %v38_v0  ;;  %622 = vset.pattern.permute.xlu0 %v740_v21  ;;  %v865_v48 = vld [vmem:[%s1146_s3] sm:$0xff]  ;;  %v232_v61 = vmul.f32 0.5, %v827_v23  ;;  %s742_s3 = smov 126   ;;  %v233_v63 = vmul.f32 0.5, %v821_v22  ;;  %vm205_vm8 = vcmask 1044480  }
   0x9   :  { %v158_v53 = vperm.slane %v865_v48, 1  ;;  %v147_v56 = vperm.slane %v865_v48, 0  ;;  %v246_v5 = vmul.f32 0.5, %v865_v48  ;;  %s577_s29 = sshll.u32 %s748_s28, 4  ;;  %s579_s6 = sshll.u32 %s1147_s4, 4  ;;  %s578_s29 = int_to_ptr.vmem [resolvable:$true] %s577_s29  ;;  %s580_s6 = int_to_ptr.hbm [resolvable:$true] %s579_s6 }
   0xa   :  { %vm43_vm0 = vcmp.ge.s32.totalorder %v781_v2, 11  ;;  %vm44_vm1 = vcmp.lt.s32.totalorder %v781_v2, 22  ;;  %vm46_vm2 = vcmp.ge.s32.totalorder %v781_v2, 22  ;;  %vm47_vm3 = vcmp.lt.s32.totalorder %v781_v2, 29 }
   0xb   :  { %vm787_vm4 = vmand %vm43_vm0, %vm44_vm1  ;;  %vm41_vm5 = vcmp.lt.s32.totalorder %v781_v2, 11 }
   0xc   :  { %vm795_vm6 = vmand %vm46_vm2, %vm47_vm3  ;;  %v49_v7 = vsel %vm41_vm5, %v597_v6, -inf  ;;  %v60_v8 = vsel %vm787_vm4, %v597_v6, -inf  ;;  %v50_v14 = vsel %vm41_vm5, %v598_v10, -inf  ;;  %v61_v15 = vsel %vm787_vm4, %v598_v10, -inf }
   0xd   :  { %v70_v9 = vsel %vm795_vm6, %v597_v6, -inf  ;;  %v52_v11 = vsel %vm51_vm7, %v49_v7, -inf  ;;  %v62_v12 = vsel %vm51_vm7, %v60_v8, -inf  ;;  %v71_v17 = vsel %vm795_vm6, %v598_v10, -inf }
   0xe   :  { %v72_v13 = vsel %vm51_vm7, %v70_v9, -inf  ;;  %53 = vmax.xlane.f32.xlu0 %v52_v11  ;;  %63 = vmax.xlane.f32.xlu1 %v62_v12  ;;  %v55_v18 = vsel %vm51_vm7, %v50_v14, -inf  ;;  %v65_v19 = vsel %vm51_vm7, %v61_v15, -inf  ;;  %v75_v20 = vsel %vm51_vm7, %v71_v17, -inf }
   0xf   :  { %73 = vmax.xlane.f32.xlu2 %v72_v13 }
  0x16   :  { %56 = vmax.xlane.f32.xlu0 %v55_v18  ;;  %66 = vmax.xlane.f32.xlu1 %v65_v19 }
  0x17   :  { %76 = vmax.xlane.f32.xlu2 %v75_v20 }
  0x2a   :  { %177 = vperm.xlu0 %622, %v821_v22  }
  0x2f   :  { %151 = vperm.xlu2 %618, %v827_v23   ;;  %144 = vperm.xlu1 %617, %v821_v22  }
  0x32   :  { %623 = vset.pattern.permute.xlu0 %v739_v16 }
  0x37   :  { %155 = vperm.xlu2 %618, %v821_v22   ;;  %619 = vset.pattern.permute.xlu1 %v741_v24 }
  0x38   :  { %162 = vperm.xlu1 %619, %v827_v23  }
  0x3f   :  { %620 = vset.pattern.permute.xlu2 %v741_v24  ;;  %v169_v24 = vperm.slane %v865_v48, 2 }
  0x40   :  { %166 = vperm.xlu2 %620, %v821_v22   ;;  %621 = vset.pattern.permute.xlu1 %v740_v21 }
  0x41   :  { %173 = vperm.xlu1 %621, %v827_v23  }
  0x48   :  { %624 = vset.pattern.permute.xlu2 %v739_v16 }
  0x49   :  { %625 = vset.pattern.permute.xlu1 %v739_v16 }
  0x81   :  { %v54_v25 = vpop.xlane.xlu0 %53  ;;  %v64_v26 = vpop.xlane.xlu1 %63 }
  0x82   :  { %v58_v27 = vsel %vm41_vm5, %v54_v25, 0.0  ;;  %v74_v28 = vpop.xlane.xlu2 %73 }
  0x83   :  { %v68_v29 = vsel %vm787_vm4, %v64_v26, %v58_v27 }
  0x84   :  { %v78_v30 = vsel %vm795_vm6, %v74_v28, %v68_v29 }
  0x85   :  { %v80_v31 = vsub.f32 %v597_v6, %v78_v30 }
  0x87   :  { %v82_v32 = vmul.f32 1.442695, %v80_v31 }
  0x89   :  { %647 = vpow2.f32 %v82_v32  ;;  %v57_v33 = vpop.xlane.xlu0 %56  ;;  %v67_v34 = vpop.xlane.xlu1 %66 }
  0x8a   :  { %v59_v35 = vsel %vm41_vm5, %v57_v33, 0.0  ;;  %v77_v36 = vpop.xlane.xlu2 %76 }
  0x8b   :  { %v69_v37 = vsel %vm787_vm4, %v67_v34, %v59_v35 }
  0x8c   :  { %v79_v38 = vsel %vm795_vm6, %v77_v36, %v69_v37  ;;  %v133_v37 = vld [vmem:[#allocation2 + $0x18] sm:$0x1f] }
  0x8d   :  { %v81_v39 = vsub.f32 %v598_v10, %v79_v38  ;;  %599 = vmatpush.msk.msra.mxu1 %vm205_vm8, %v133_v37  ;;  %592 = vmatpush.msk.msra.mxu0 %vm205_vm8, %v133_v37  ;;  %v132_v38 = vld [vmem:[#allocation2 + $0x10] sm:$0xff] }
  0x8f   :  { %v850_v40 = vpop.eup %647  ;;  %v84_v41 = vmul.f32 1.442695, %v81_v39  ;;  %v131_v39 = vld [vmem:[#allocation2 + $0x8] sm:$0xff]  ;;  %600 = vmatpush.msra.mxu1 %v132_v38  ;;  %222 = vmatpush.msra.mxu0 %v132_v38 }
  0x90   :  { %v100_v42 = vsel %vm787_vm4, %v850_v40, 0.0  ;;  %v86_v43 = vsel %vm41_vm5, %v850_v40, 0.0  ;;  %v114_v6 = vsel %vm795_vm6, %v850_v40, 0.0 }
  0x91   :  { %649 = vpow2.f32 %v84_v41  ;;  %v102_v44 = vsel %vm51_vm7, %v100_v42, 0.0  ;;  %v88_v45 = vsel %vm51_vm7, %v86_v43, 0.0  ;;  %v116_v7 = vsel %vm51_vm7, %v114_v6, 0.0  ;;  %601 = vmatpush.msra.mxu1 %v131_v39  ;;  %v130_v42 = vld [vmem:[#allocation2] sm:$0xff]  ;;  %223 = vmatpush.msra.mxu0 %v131_v39 }
  0x92   :  { %103 = vadd.xlane.f32.xlu2 %v102_v44  ;;  %89 = vadd.xlane.f32.xlu0 %v88_v45  ;;  %v152_v46 = vpop.permute.xlu2 %151  ;;  %v744_v41 = vmov 6   ;;  %v745_v43 = vmov 4  }
  0x93   :  { %v159_v21 = vsub.f32 %v152_v46, %v158_v53  ;;  %602 = vmatpush.msra.mxu1 %v130_v42  ;;  %224 = vmatpush.msra.mxu0 %v130_v42 }
  0x95   :  { %v185_v28 = vand.u32 2147483647, %v159_v21 }
  0x97   :  { %v860_v47 = vpop.eup %649 }
  0x98   :  { %v101_v49 = vsel %vm787_vm4, %v860_v47, 0.0  ;;  %v87_v50 = vsel %vm41_vm5, %v860_v47, 0.0  ;;  %v115_v0 = vsel %vm795_vm6, %v860_v47, 0.0 }
  0x99   :  { %v105_v51 = vsel %vm51_vm7, %v101_v49, 0.0  ;;  %v91_v52 = vsel %vm51_vm7, %v87_v50, 0.0  ;;  %v119_v4 = vsel %vm51_vm7, %v115_v0, 0.0 }
  0x9a   :  { %106 = vadd.xlane.f32.xlu0 %v105_v51  ;;  %92 = vadd.xlane.f32.xlu1 %v91_v52  ;;  %v156_v54 = vpop.permute.xlu2 %155 }
  0x9b   :  { %v160_v55 = vsub.f32 %v156_v54, %v158_v53 }
  0x9c   :  { %v894_v10 = vpop.permute.xlu0 %177 }
  0x9d   :  { %v186_v58 = vand.u32 2147483647, %v160_v55 }
  0xa1   :  { %v145_v57 = vpop.permute.xlu1 %144 }
  0xa2   :  { %v149_v59 = vsub.f32 %v145_v57, %v147_v56  ;;  %v890_v8 = vpop.permute.xlu2 %166 }
  0xa4   :  { %v184_v60 = vand.u32 2147483647, %v149_v59 }
  0xa6   :  { %v878_v62 = vadd.f32 %v186_v58, %v184_v60 }
  0xaa   :  { %236 = vrot.lane.b32.xlu2 %v232_v61, %s742_s3  ;;  %v163_v11 = vpop.permute.xlu1 %162  ;;  %v747_v61 = vmov 7  }
  0xab   :  { %v170_v26 = vsub.f32 %v163_v11, %v169_v24 }
  0xad   :  { %v189_v30 = vand.u32 2147483647, %v170_v26 }
  0xae   :  { %139 = vperm.xlu0 %623, %v827_v23  }
  0xb3   :  { %238 = vrot.lane.b32.xlu1 %v233_v63, %s742_s3  ;;  %v910_v18 = vpop.permute.xlu1 %173 }
  0xd3   :  { %120 = vadd.xlane.f32.xlu2 %v119_v4 }
  0xdd   :  { %117 = vadd.xlane.f32.xlu1 %v116_v7 }
 0x105   :  { %v892_v9 = vpop.xlane.xlu2 %103  ;;  %v896_v13 = vpop.xlane.xlu0 %89 }
 0x10d   :  { %v237_v12 = vpop.permute.xlu2 %236  ;;  %v107_v19 = vpop.xlane.xlu0 %106 }
 0x10e   :  { %v899_v14 = vsub.f32 %v827_v23, %v237_v12  ;;  %v902_v15 = vadd.f32 %v237_v12, %v827_v23  ;;  %v93_v20 = vpop.xlane.xlu1 %92 }
 0x10f   :  { %651 = vrcp.f32 %v93_v20 }
 0x110   :  { %v906_v17 = vsub.f32 %v902_v15, %v899_v14  ;;  %271 = vperm.xlu0 %623, %v902_v15   ;;  %653 = vrcp.f32 %v107_v19 }
 0x112   :  { %256 = vrot.lane.b32.xlu2 %v906_v17, %s743_s27 }
 0x115   :  { %v652_v44 = vpop.eup %651 }
 0x116   :  { %v654_v46 = vpop.eup %653  ;;  %v97_v49 = vmul.f32 -1.0, %v652_v44 }
 0x117   :  { %v111_v50 = vmul.f32 -1.0, %v654_v46 }
 0x118   :  { %627 = vset.pattern.permute.xlu0 %v738_v1  ;;  %v99_v51 = vsel %vm41_vm5, %v97_v49, 0.0 }
 0x119   :  { %v113_v55 = vsel %vm787_vm4, %v111_v50, %v99_v51 }
 0x120   :  { %v140_v25 = vpop.permute.xlu0 %139 }
 0x121   :  { %v148_v27 = vsub.f32 %v140_v25, %v147_v56 }
 0x123   :  { %v183_v29 = vand.u32 2147483647, %v148_v27 }
 0x125   :  { %v187_v31 = vadd.f32 %v185_v28, %v183_v29  ;;  %v239_v32 = vpop.permute.xlu1 %238  ;;  %v388_v29 = vperm.slane %v865_v48, 4 }
 0x126   :  { %v917_v33 = vsub.f32 %v821_v22, %v239_v32  ;;  %v920_v34 = vadd.f32 %v239_v32, %v821_v22  ;;  %v399_v32 = vperm.slane %v865_v48, 5 }
 0x127   :  { %v922_v35 = vadd.f32 %v189_v30, %v187_v31 }
 0x128   :  { %304 = vperm.xlu0 %627, %v920_v34   ;;  %276 = vperm.xlu2 %624, %v920_v34   ;;  %v928_v36 = vsub.f32 %v920_v34, %v917_v33 }
 0x12a   :  { %258 = vrot.lane.b32.xlu1 %v928_v36, %s743_s27 }
 0x130   :  { %633 = vset.pattern.permute.xlu0 %v744_v41  ;;  %289 = vperm.xlu2 %624, %v917_v33  }
 0x131   :  { %407 = vperm.xlu0 %633, %v821_v22  }
 0x132   :  { %284 = vperm.xlu1 %625, %v899_v14  }
 0x138   :  { %628 = vset.pattern.permute.xlu2 %v738_v1 }
 0x139   :  { %634 = vset.pattern.permute.xlu0 %v745_v43  ;;  %311 = vperm.xlu2 %628, %v899_v14  }
 0x13a   :  { %381 = vperm.xlu0 %634, %v827_v23   ;;  %626 = vset.pattern.permute.xlu1 %v738_v1  ;;  %v746_v1 = vmov 5  }
 0x13b   :  { %300 = vperm.xlu1 %626, %v902_v15  }
 0x141   :  { %629 = vset.pattern.permute.xlu2 %v745_v43 }
 0x142   :  { %478 = vperm.xlu0 %634, %v899_v14   ;;  %385 = vperm.xlu2 %629, %v821_v22  }
 0x143   :  { %315 = vperm.xlu1 %626, %v917_v33  }
 0x146   :  { %v121_v45 = vpop.xlane.xlu2 %120 }
 0x147   :  { %655 = vrcp.f32 %v121_v45 }
 0x148   :  { %657 = vrcp.f32 %v896_v13 }
 0x149   :  { %659 = vrcp.f32 %v892_v9 }
 0x14a   :  { %643 = vset.pattern.permute.xlu0 %v746_v1  ;;  %631 = vset.pattern.permute.xlu2 %v746_v1 }
 0x14b   :  { %508 = vperm.xlu0 %643, %v917_v33   ;;  %396 = vperm.xlu2 %631, %v821_v22  }
 0x14c   :  { %630 = vset.pattern.permute.xlu1 %v746_v1 }
 0x14d   :  { %v656_v52 = vpop.eup %655  ;;  %392 = vperm.xlu1 %630, %v827_v23  }
 0x14e   :  { %v125_v53 = vmul.f32 -1.0, %v656_v52  ;;  %v658_v54 = vpop.eup %657 }
 0x14f   :  { %v660_v59 = vpop.eup %659  ;;  %v96_v60 = vmul.f32 -1.0, %v658_v54 }
 0x150   :  { %v118_v56 = vpop.xlane.xlu1 %117  ;;  %v127_v57 = vsel %vm795_vm6, %v125_v53, %v113_v55  ;;  %v110_v63 = vmul.f32 -1.0, %v660_v59 }
 0x151   :  { %661 = vrcp.f32 %v118_v56  ;;  %v129_v58 = vmul.f32 %v860_v47, %v127_v57  ;;  %v98_v0 = vsel %vm41_vm5, %v96_v60, 0.0 }
 0x152   :  { %v112_v47 = vsel %vm787_vm4, %v110_v63, %v98_v0 }
 0x153   :  { %635 = vset.pattern.permute.xlu2 %v747_v61  ;;  %594 = vmatmul.msk.f32.vlgmr.msra.gmra.mxu1 %vm51_vm7, %v129_v58 }
 0x154   :  { %414 = vperm.xlu2 %635, %v827_v23   ;;  %646 = vset.pattern.permute.xlu0 %v745_v43 }
 0x155   :  { %632 = vset.pattern.permute.xlu1 %v744_v41 }
 0x156   :  { %403 = vperm.xlu1 %632, %v827_v23  }
 0x157   :  { %v662_v4 = vpop.eup %661 }
 0x158   :  { %v124_v6 = vmul.f32 -1.0, %v662_v4 }
 0x15a   :  { %v126_v7 = vsel %vm795_vm6, %v124_v6, %v112_v47  ;;  %v410_v47 = vperm.slane %v865_v48, 6 }
 0x15b   :  { %v128_v9 = vmul.f32 %v850_v40, %v126_v7 }
 0x15c   :  { %637 = vset.pattern.permute.xlu2 %v745_v43 }
 0x15d   :  { %467 = vperm.xlu2 %637, %v902_v15   ;;  %593 = vmatmul.msk.f32.vlgmr.msra.gmra.mxu0 %vm51_vm7, %v128_v9  ;;  %v421_v9 = vperm.slane %v865_v48, 7 }
 0x15e   :  { %636 = vset.pattern.permute.xlu1 %v747_v61 }
 0x15f   :  { %418 = vperm.xlu1 %636, %v821_v22   ;;  %v248_v22 = vrot.slane %v246_v5, 2 }
 0x161   :  { %v983_v40 = vadd.f32 %v248_v22, %v865_v48  ;;  %v986_v11 = vsub.f32 %v865_v48, %v248_v22 }
 0x163   :  { %v989_v12 = vperm.slane %v983_v40, 0  ;;  %v992_v13 = vperm.slane %v986_v11, 0  ;;  %v307_v44 = vperm.slane %v983_v40, 1  ;;  %v318_v46 = vperm.slane %v986_v11, 1 }
 0x165   :  { %482 = vperm.xlu2 %637, %v917_v33  }
 0x167   :  { %638 = vset.pattern.permute.xlu1 %v745_v43 }
 0x168   :  { %471 = vperm.xlu1 %638, %v920_v34  }
 0x16c   :  { %v257_v2 = vpop.permute.xlu2 %256 }
 0x16d   :  { %640 = vset.pattern.permute.xlu2 %v746_v1  ;;  %v262_v3 = vmul.f32 %v257_v2, %v906_v17 }
 0x16e   :  { %497 = vperm.xlu2 %640, %v920_v34  }
 0x170   :  { %639 = vset.pattern.permute.xlu1 %v746_v1 }
 0x171   :  { %493 = vperm.xlu1 %639, %v902_v15  }
 0x176   :  { %641 = vset.pattern.permute.xlu2 %v739_v16 }
 0x177   :  { %329 = vperm.xlu2 %641, %v262_v3  }
 0x179   :  { %504 = vperm.xlu1 %639, %v899_v14  }
 0x17f   :  { %644 = vset.pattern.permute.xlu2 %v745_v43 }
 0x180   :  { %521 = vperm.xlu2 %644, %v262_v3  }
 0x181   :  { %642 = vset.pattern.permute.xlu1 %v739_v16 }
 0x182   :  { %v277_v23 = vpop.permute.xlu2 %276  ;;  %v1005_v33 = vpop.permute.xlu0 %271 }
 0x183   :  { %v281_v15 = vmin.f32 %v277_v23, %v989_v12  ;;  %v349_v17 = vmax.f32 %v277_v23, %v989_v12 }
 0x18a   :  { %v290_v14 = vpop.permute.xlu2 %289 }
 0x18b   :  { %v294_v16 = vmax.f32 %v290_v14, %v992_v13  ;;  %v351_v19 = vmin.f32 %v290_v14, %v992_v13 }
 0x18d   :  { %v296_v20 = vsub.f32 %v281_v15, %v294_v16  ;;  %v353_v21 = vsub.f32 %v349_v17, %v351_v19  ;;  %v264_v19 = vsub.f32 %v983_v40, %v986_v11 }
 0x18f   :  { %v298_v55 = vmax.f32 %v296_v20, 0.0  ;;  %v355_v56 = vmax.f32 %v353_v21, 0.0 }
 0x193   :  { %v998_v25 = vpop.permute.xlu2 %311 }
 0x19a   :  { %v305_v42 = vpop.permute.xlu0 %304 }
 0x19b   :  { %v309_v1 = vmin.f32 %v305_v42, %v307_v44  ;;  %v357_v50 = vmax.f32 %v305_v42, %v307_v44  ;;  %v348_v42 = vmax.f32 %v1005_v33, %v989_v12 }
 0x19c   :  { %v259_v26 = vpop.permute.xlu1 %258  ;;  %v386_v27 = vpop.permute.xlu2 %385 }
 0x19d   :  { %v263_v28 = vmul.f32 %v259_v26, %v928_v36  ;;  %v390_v30 = vsub.f32 %v386_v27, %v388_v29  ;;  %v266_v27 = vrot.slane %v264_v19, 1 }
 0x19f   :  { %334 = vperm.xlu1 %642, %v263_v28   ;;  %v425_v37 = vmul.f32 %v390_v30, %v390_v30 }
 0x1a3   :  { %v1012_v53 = vpop.permute.xlu0 %407 }
 0x1a4   :  { %v1002_v31 = vpop.permute.xlu1 %284 }
 0x1a5   :  { %v397_v34 = vpop.permute.xlu2 %396 }
 0x1a6   :  { %v401_v38 = vsub.f32 %v397_v34, %v399_v32 }
 0x1a7   :  { %645 = vset.pattern.permute.xlu1 %v745_v43 }
 0x1a8   :  { %v427_v39 = vmul.f32 %v401_v38, %v401_v38  ;;  %525 = vperm.xlu1 %645, %v263_v28   ;;  %v280_v28 = vmin.f32 %v1005_v33, %v989_v12 }
 0x1aa   :  { %v1008_v41 = vadd.f32 %v427_v39, %v425_v37  ;;  %v1044_v37 = vmul.f32 %v266_v27, %v264_v19 }
 0x1ac   :  { %v382_v0 = vpop.permute.xlu0 %381 }
 0x1ad   :  { %v301_v36 = vpop.permute.xlu1 %300  ;;  %v389_v4 = vsub.f32 %v382_v0, %v388_v29  ;;  %v293_v29 = vmax.f32 %v1002_v31, %v992_v13 }
 0x1ae   :  { %v415_v45 = vpop.permute.xlu2 %414  ;;  %v308_v30 = vmin.f32 %v301_v36, %v307_v44 }
 0x1af   :  { %v424_v7 = vmul.f32 %v389_v4, %v389_v4  ;;  %v422_v23 = vsub.f32 %v415_v45, %v421_v9  ;;  %v295_v38 = vsub.f32 %v280_v28, %v293_v29  ;;  %v350_v45 = vmin.f32 %v1002_v31, %v992_v13 }
 0x1b1   :  { %v434_v17 = vmul.f32 %v422_v23, %v422_v23 }
 0x1b5   :  { %v316_v49 = vpop.permute.xlu1 %315 }
 0x1b6   :  { %v320_v51 = vmax.f32 %v316_v49, %v318_v46  ;;  %v359_v52 = vmin.f32 %v316_v49, %v318_v46  ;;  %v356_v49 = vmax.f32 %v301_v36, %v307_v44  ;;  %v1060_v44 = vperm.slane %v986_v11, 4 }
 0x1b7   :  { %v1018_v61 = vpop.permute.xlu2 %467 }
 0x1b8   :  { %v322_v54 = vsub.f32 %v309_v1, %v320_v51  ;;  %v361_v43 = vsub.f32 %v357_v50, %v359_v52  ;;  %v337_v1 = vperm.slane %v1044_v37, 0  ;;  %v358_v52 = vmin.f32 %v998_v25, %v318_v46 }
 0x1ba   :  { %v324_v57 = vmax.f32 %v322_v54, 0.0  ;;  %v363_v58 = vmax.f32 %v361_v43, 0.0  ;;  %v297_v54 = vmax.f32 %v295_v38, 0.0 }
 0x1bc   :  { %v1014_v59 = vmul.f32 %v363_v58, %v355_v56  ;;  %v1016_v60 = vmul.f32 %v324_v57, %v298_v55  ;;  %v352_v55 = vsub.f32 %v348_v42, %v350_v45  ;;  %v360_v56 = vsub.f32 %v356_v49, %v358_v52 }
 0x1bd   :  { %v1063_v58 = vperm.slane %v983_v40, 4 }
 0x1be   :  { %v354_v31 = vmax.f32 %v352_v55, 0.0  ;;  %v362_v36 = vmax.f32 %v360_v56, 0.0 }
 0x1bf   :  { %v393_v63 = vpop.permute.xlu1 %392  ;;  %v1022_v3 = vpop.permute.xlu2 %482 }
 0x1c0   :  { %v400_v6 = vsub.f32 %v393_v63, %v399_v32  ;;  %v319_v32 = vmax.f32 %v998_v25, %v318_v46  ;;  %v479_v63 = vpop.permute.xlu0 %478  ;;  %v364_v0 = vmul.f32 %v362_v36, %v354_v31 }
 0x1c1   :  { %v486_v4 = vmax.f32 %v479_v63, %v1060_v44 }
 0x1c2   :  { %v426_v2 = vmul.f32 %v400_v6, %v400_v6  ;;  %v321_v39 = vsub.f32 %v308_v30, %v319_v32  ;;  %v366_v23 = vmax.f32 %v364_v0, 1e-09  ;;  %v180_v32 = vperm.slane %v865_v48, 3 }
 0x1c4   :  { %v428_v14 = vadd.f32 %v426_v2, %v424_v7  ;;  %v323_v43 = vmax.f32 %v321_v39, 0.0  ;;  %v541_v7 = vmin.f32 %v479_v63, %v1060_v44  ;;  %v475_v2 = vmin.f32 %v1018_v61, %v1063_v58 }
 0x1c5   :  { %v181_v42 = vsub.f32 %v910_v18, %v180_v32 }
 0x1c6   :  { %v325_v13 = vmul.f32 %v323_v43, %v297_v54 }
 0x1c8   :  { %v404_v5 = vpop.permute.xlu1 %403  ;;  %v1030_v20 = vpop.permute.xlu2 %497 }
 0x1c9   :  { %v411_v22 = vsub.f32 %v404_v5, %v410_v47  ;;  %v539_v5 = vmax.f32 %v1018_v61, %v1063_v58 }
 0x1cb   :  { %v430_v15 = vmul.f32 %v411_v22, %v411_v22 }
 0x1cd   :  { %v432_v16 = vadd.f32 %v430_v15, %v428_v14  ;;  %v1075_v14 = vperm.slane %v986_v11, 5  ;;  %v1078_v15 = vperm.slane %v983_v40, 5  ;;  %v412_v40 = vsub.f32 %v1012_v53, %v410_v47 }
 0x1ce   :  { %v528_v11 = vperm.slane %v1044_v37, 4 }
 0x1cf   :  { %v1034_v26 = vadd.f32 %v434_v17, %v432_v16  ;;  %v488_v17 = vsub.f32 %v475_v2, %v486_v4  ;;  %v543_v16 = vsub.f32 %v539_v5, %v541_v7  ;;  %v431_v56 = vmul.f32 %v412_v40, %v412_v40 }
 0x1d1   :  { %v1032_v21 = vpop.permute.xlu1 %418  ;;  %v1042_v34 = vmax.f32 %v1034_v26, 1e-20  ;;  %v330_v51 = vpop.permute.xlu2 %329  ;;  %v490_v45 = vmax.f32 %v488_v17, 0.0  ;;  %v545_v52 = vmax.f32 %v543_v16, 0.0  ;;  %v433_v7 = vadd.f32 %v431_v56, %v1008_v41 }
 0x1d2   :  { %v338_v12 = vadd.f32 %v337_v1, %v330_v51  ;;  %v423_v53 = vsub.f32 %v1032_v21, %v421_v9 }
 0x1d3   :  { %663 = vrsqrt.f32 %v1042_v34  ;;  %vm446_vm9 = vweird.f32 %v1042_v34 }
 0x1d4   :  { %v340_v57 = vsub.f32 %v338_v12, %v325_v13  ;;  %v435_v9 = vmul.f32 %v423_v53, %v423_v53 }
 0x1d6   :  { %v342_v6 = vmax.f32 %v340_v57, 1e-09  ;;  %v370_v47 = vsub.f32 %v364_v0, %v340_v57 }
 0x1d8   :  { %665 = vrcp.f32 %v342_v6  ;;  %v193_v6 = vand.u32 2147483647, %v181_v42 }
 0x1d9   :  { %v1057_v33 = vpop.eup %663  ;;  %667 = vrcp.f32 %v366_v23 }
 0x1da   :  { %v1052_v50 = vpop.permute.xlu1 %471  ;;  %v441_v25 = vmul.f32 %v1057_v33, %v1042_v34  ;;  %v522_v49 = vpop.permute.xlu2 %521  ;;  %vm447_vm10 = vweird.f32 %v1057_v33  ;;  %v195_v57 = vadd.f32 %v193_v6, %v922_v35 }
 0x1db   :  { %v529_v12 = vadd.f32 %v528_v11, %v522_v49  ;;  %vm448_vm11 = vmor %vm446_vm9, %vm447_vm10  ;;  %v226_v5 = vpop.f32.mrf.mxu0  ;;  %v367_v49 = vmax.f32 %v1014_v59, 1e-09 }
 0x1dc   :  { %v442_v22 = vmul.f32 %v1057_v33, %v441_v25 }
 0x1de   :  { %v443_v19 = vmul.f32 0.5, %v442_v22  ;;  %v666_v51 = vpop.eup %665  ;;  %v197_v22 = vmul.f32 5.0, %v195_v57 }
 0x1df   :  { %v346_v36 = vmul.f32 %v666_v51, %v325_v13  ;;  %v668_v25 = vpop.eup %667  ;;  %v1103_v13 = vadd.f32 %v435_v9, %v433_v7  ;;  %v509_v51 = vpop.permute.xlu0 %508 }
 0x1e0   :  { %v444_v54 = vsub.f32 1.5, %v443_v19  ;;  %v372_v21 = vmul.f32 %v668_v25, %v370_v47  ;;  %v227_v19 = vadd.f32 %v226_v5, %v197_v22  ;;  %v550_v56 = vmin.f32 %v509_v51, %v1075_v14 }
 0x1e1   :  { %v439_v41 = vmax.f32 %v1103_v13, 1e-20  ;;  %v171_v47 = vsub.f32 %v890_v8, %v169_v24  ;;  %v182_v24 = vsub.f32 %v894_v10, %v180_v32 }
 0x1e2   :  { %v374_v0 = vsub.f32 %v346_v36, %v372_v21 }
 0x1e3   :  { %v494_v46 = vpop.permute.xlu1 %493  ;;  %v190_v8 = vand.u32 2147483647, %v171_v47  ;;  %vm456_vm12 = vweird.f32 %v439_v41 }
 0x1e4   :  { %v501_v28 = vmin.f32 %v494_v46, %v1078_v15  ;;  %v547_v29 = vmax.f32 %v494_v46, %v1078_v15  ;;  %v445_v46 = vmul.f32 %v1057_v33, %v444_v54  ;;  %v376_v23 = vmul.f32 -2.0, %v374_v0 }
 0x1e5   :  { %v548_v54 = vmax.f32 %v1030_v20, %v1078_v15  ;;  %v192_v21 = vadd.f32 %v190_v8, %v878_v62 }
 0x1e6   :  { %v449_v2 = vsel %vm448_vm11, %v1057_v33, %v445_v46 }
 0x1e7   :  { %v460_v17 = vmul.f32 %v449_v2, %v1034_v26  ;;  %v540_v26 = vmax.f32 %v1052_v50, %v1063_v58  ;;  %v552_v36 = vsub.f32 %v548_v54, %v550_v56 }
 0x1eb   :  { %v505_v27 = vpop.permute.xlu1 %504 }
 0x1ec   :  { %v512_v61 = vmax.f32 %v505_v27, %v1075_v14  ;;  %v549_v30 = vmin.f32 %v505_v27, %v1075_v14 }
 0x1ee   :  { %v514_v38 = vsub.f32 %v501_v28, %v512_v61  ;;  %v551_v39 = vsub.f32 %v547_v29, %v549_v30  ;;  %v378_v29 = vadd.f32 %v376_v23, %v227_v19  ;;  %v462_v61 = vmul.f32 5.0, %v460_v17 }
 0x1f0   :  { %v516_v43 = vmax.f32 %v514_v38, 0.0  ;;  %v553_v55 = vmax.f32 %v551_v39, 0.0  ;;  %v464_v40 = vadd.f32 %v462_v61, %v378_v29 }
 0x1f2   :  { %v518_v18 = vmul.f32 %v516_v43, %v490_v45  ;;  %v555_v31 = vmul.f32 %v553_v55, %v545_v52  ;;  %v542_v52 = vmin.f32 %v1022_v3, %v1060_v44  ;;  %v476_v55 = vmin.f32 %v1052_v50, %v1063_v58 }
 0x1f3   :  { %v513_v58 = vmax.f32 %v509_v51, %v1075_v14 }
 0x1f4   :  { %v531_v63 = vsub.f32 %v529_v12, %v518_v18  ;;  %v557_v4 = vmax.f32 %v555_v31, 1e-09  ;;  %v544_v53 = vsub.f32 %v540_v26, %v542_v52  ;;  %v487_v12 = vmax.f32 %v1022_v3, %v1060_v44 }
 0x1f5   :  { %v554_v44 = vmax.f32 %v552_v36, 0.0 }
 0x1f6   :  { %v533_v34 = vmax.f32 %v531_v63, 1e-09  ;;  %669 = vrcp.f32 %v557_v4  ;;  %v561_v27 = vsub.f32 %v555_v31, %v531_v63  ;;  %v489_v46 = vsub.f32 %v476_v55, %v487_v12 }
 0x1f7   :  { %v546_v63 = vmax.f32 %v544_v53, 0.0 }
 0x1f8   :  { %671 = vrcp.f32 %v533_v34  ;;  %v194_v34 = vand.u32 2147483647, %v182_v24 }
 0x1f9   :  { %673 = vrsqrt.f32 %v439_v41  ;;  %v556_v14 = vmul.f32 %v554_v44, %v546_v63 }
 0x1fa   :  { %675 = vrcp.f32 %v367_v49 }
 0x1fb   :  { %v558_v2 = vmax.f32 %v556_v14, 1e-09 }
 0x1fc   :  { %v670_v16 = vpop.eup %669 }
 0x1fd   :  { %v563_v30 = vmul.f32 %v670_v16, %v561_v27 }
 0x1fe   :  { %v672_v28 = vpop.eup %671 }
 0x1ff   :  { %v537_v35 = vmul.f32 %v672_v28, %v518_v18  ;;  %v674_v42 = vpop.eup %673  ;;  %v502_v18 = vmin.f32 %v1030_v20, %v1078_v15 }
 0x200   :  { %v451_v45 = vmul.f32 %v674_v42, %v439_v41  ;;  %v676_v7 = vpop.eup %675  ;;  %vm457_vm13 = vweird.f32 %v674_v42  ;;  %v229_v41 = vpop.f32.mrf.mxu1 }
 0x201   :  { %v565_v33 = vsub.f32 %v537_v35, %v563_v30  ;;  %v515_v3 = vsub.f32 %v502_v18, %v513_v58  ;;  %vm458_vm14 = vmor %vm456_vm12, %vm457_vm13 }
 0x202   :  { %v452_v43 = vmul.f32 %v674_v42, %v451_v45 }
 0x203   :  { %v567_v38 = vmul.f32 -2.0, %v565_v33  ;;  %v517_v57 = vmax.f32 %v515_v3, 0.0 }
 0x204   :  { %v453_v25 = vmul.f32 0.5, %v452_v43 }
 0x205   :  { %v569_v39 = vadd.f32 %v567_v38, %v464_v40 }
 0x206   :  { %v454_v20 = vsub.f32 1.5, %v453_v25 }
 0x207   :  { %571 = vst [vmem:[#allocation5] sm:$0xff] %v569_v39 }
 0x208   :  { %v455_v48 = vmul.f32 %v674_v42, %v454_v20 }
 0x20a   :  { %v459_v23 = vsel %vm458_vm14, %v674_v42, %v455_v48 }
 0x20b   :  { %v461_v62 = vmul.f32 %v459_v23, %v1103_v13 }
 0x20d   :  { %v463_v37 = vmul.f32 5.0, %v461_v62 }
 0x211   :  { %v335_v31 = vpop.permute.xlu1 %334 }
 0x212   :  { %v339_v50 = vadd.f32 %v337_v1, %v335_v31  ;;  %v491_v1 = vmax.f32 %v489_v46, 0.0 }
 0x214   :  { %v341_v4 = vsub.f32 %v339_v50, %v1016_v60  ;;  %v519_v10 = vmul.f32 %v517_v57, %v491_v1 }
 0x216   :  { %v343_v15 = vmax.f32 %v341_v4, 1e-09  ;;  %v371_v6 = vsub.f32 %v1014_v59, %v341_v4  ;;  %v196_v59 = vadd.f32 %v194_v34, %v192_v21 }
 0x218   :  { %677 = vrcp.f32 %v343_v15  ;;  %v373_v9 = vmul.f32 %v676_v7, %v371_v6  ;;  %v198_v19 = vmul.f32 5.0, %v196_v59 }
 0x219   :  { %679 = vrcp.f32 %v558_v2 }
 0x21a   :  { %v526_v0 = vpop.permute.xlu1 %525  ;;  %v230_v28 = vadd.f32 %v229_v41, %v198_v19 }
 0x21b   :  { %v530_v32 = vadd.f32 %v528_v11, %v526_v0 }
 0x21d   :  { %v532_v5 = vsub.f32 %v530_v32, %v519_v10 }
 0x21e   :  { %v678_v22 = vpop.eup %677 }
 0x21f   :  { %v347_v17 = vmul.f32 %v678_v22, %v1016_v60  ;;  %v534_v16 = vmax.f32 %v532_v5, 1e-09  ;;  %v562_v61 = vsub.f32 %v556_v14, %v532_v5  ;;  %v680_v35 = vpop.eup %679 }
 0x221   :  { %v375_v27 = vsub.f32 %v347_v17, %v373_v9  ;;  %681 = vrcp.f32 %v534_v16  ;;  %v564_v38 = vmul.f32 %v680_v35, %v562_v61 }
 0x223   :  { %v377_v29 = vmul.f32 -2.0, %v375_v27 }
 0x225   :  { %v379_v11 = vadd.f32 %v377_v29, %v230_v28 }
 0x227   :  { %v682_v30 = vpop.eup %681  ;;  %v465_v33 = vadd.f32 %v463_v37, %v379_v11 }
 0x228   :  { %v538_v40 = vmul.f32 %v682_v30, %v519_v10 }
 0x22a   :  { %v566_v39 = vsub.f32 %v538_v40, %v564_v38 }
 0x22c   :  { %v568_v60 = vmul.f32 -2.0, %v566_v39 }
 0x22e   :  { %v570_v13 = vadd.f32 %v568_v60, %v465_v33 }
 0x230   :  { %572 = vst [vmem:[#allocation5 + $0x8] sm:$0xff] %v570_v13 }
 0x231   :  { %585 = dma.vmem_to_hbm [thread:$0]  %s578_s29, 256, %s580_s6, [#allocation4], %s736_s20, %s736_s20, %s737_s21  }
 0x232   :  { %733 = dma.done.wait [#allocation4], 256  }
 0x233   :  { %734 = vsyncadd [#allocation4], 4294967040 }
 0x234   :  { %590 = vsyncpa [#allocation3], 1 }
 0x235   :  { %591 = vsyncpa [#allocation4], 1 }

</bundles_post_ra>
